<compile_context>
chip_gen: v7x
topology: tpu7x:2x2x1
jax: 0.10.0
libtpu: 0.0.40
codegen_flags: <defaults>
</compile_context>

<pallas_src>
import functools

import jax
import jax.numpy as jnp
from jax import lax
from jax.experimental import pallas as pl
from jax.experimental.pallas import tpu as pltpu

EXPANSION = 4
BN_EPS = 1e-5


# ----------------------------- Pallas kernel ------------------------------ #
def _bottleneck_kernel(x_ref, wst_ref, sst_ref, bst_ref,
                       w2_ref, s2_ref, b2_ref,
                       w3_ref, s3_ref, b3_ref,
                       out_ref, *, W, Cmid):
    x = x_ref[0]                                   # (Cin, L)  L = TH*W
    L = x.shape[-1]

    # --- fused stem: [residual 1x1 ; shortcut 1x1] in a single matmul --------
    stem = jnp.dot(wst_ref[...], x, preferred_element_type=jnp.float32)
    stem = stem * sst_ref[...] + bst_ref[...]      # folded BN for both branches
    h1 = jnp.maximum(stem[:Cmid], 0.0)             # (Cmid, L)  residual + ReLU
    sc = stem[Cmid:]                               # (Cexp, L)  shortcut (no ReLU)

    # --- (1,3) conv along W, padding (0,1): lane rolls + boundary masks ------
    w_pos = lax.broadcasted_iota(jnp.int32, (1, L), 1) % W
    mask_prev = (w_pos >= 1).astype(jnp.float32)       # zero where w == 0
    mask_next = (w_pos <= W - 2).astype(jnp.float32)   # zero where w == W-1
    sh_prev = pltpu.roll(h1, shift=1, axis=1) * mask_prev      # x[w-1]
    sh_next = pltpu.roll(h1, shift=L - 1, axis=1) * mask_next  # x[w+1]

    im2col = jnp.concatenate([sh_prev, h1, sh_next], axis=0)   # (3*Cmid, L)
    conv = jnp.dot(w2_ref[...], im2col, preferred_element_type=jnp.float32)
    h2 = jnp.maximum(conv * s2_ref[...] + b2_ref[...], 0.0)    # (Cmid, L)

    # --- 1x1 expansion conv + BN ---------------------------------------------
    h3 = jnp.dot(w3_ref[...], h2, preferred_element_type=jnp.float32)
    h3 = h3 * s3_ref[...] + b3_ref[...]                        # (Cexp, L)

    # --- residual add + final ReLU --------------------------------------------
    out_ref[0] = jnp.maximum(h3 + sc, 0.0)


# ------------------------------ JAX wrapper -------------------------------- #
def _fold_bn(gamma, beta, mean, var, eps=BN_EPS):
    scale = gamma / jnp.sqrt(var + eps)
    bias = beta - mean * scale
    # column vectors: channels live on sublanes, broadcast along lanes
    return (scale.reshape(-1, 1).astype(jnp.float32),
            bias.reshape(-1, 1).astype(jnp.float32))


def _pick_row_tile(N, H, W):
    """Row tile TH such that TH divides H and TH*W is a multiple of 128."""
    cands = [th for th in range(1, H + 1)
             if H % th == 0 and (th * W) % 128 == 0]
    if not cands:
        return H                       # whole image (block == full extent)
    # largest tile that stays lane-modest (<= 2048 lanes) while leaving at
    # least 4 grid steps for pipelining / v7x's two TensorCores.
    good = [th for th in cands if th * W <= 2048 and N * (H // th) >= 4]
    if good:
        return max(good)
    return min(cands)


@jax.jit
def asymmetric_bottleneck(x_nchw, params):
    """x_nchw: (N, Cin, H, W) float32. Returns (N, Cout*4, H, W)."""
    N, Cin, H, W = x_nchw.shape
    Cmid = params['w1'].shape[1]
    Cexp = params['w3'].shape[1]

    s1, b1 = _fold_bn(*params['bn1'])
    s2, b2 = _fold_bn(*params['bn2'])
    s3, b3 = _fold_bn(*params['bn3'])
    ss, bs = _fold_bn(*params['bns'])

    # Fused weight prep (wrapper-side, cheap, done once under jit):
    #   stem = [w1^T ; ws^T]  -> one matmul reads x once for both branches.
    w_stem = jnp.concatenate([params['w1'].T, params['ws'].T], axis=0)  # (Cmid+Cexp, Cin)
    s_stem = jnp.concatenate([s1, ss], axis=0)                          # (Cmid+Cexp, 1)
    b_stem = jnp.concatenate([b1, bs], axis=0)
    #   (1,3) conv taps fused into one (Cmid, 3*Cmid) matrix, order = [w-1, w, w+1].
    w2f = jnp.concatenate([params['w2'][k].T for k in range(3)], axis=1)
    w3t = params['w3'].T                                                # (Cexp, Cmid)

    x_flat = x_nchw.reshape(N, Cin, H * W)

    TH = _pick_row_tile(N, H, W)
    HW_T = TH * W
    grid = (N, H // TH)

    def full(shape):
        return pl.BlockSpec(shape, lambda n, h: (0,) * len(shape))

    grid_spec = pltpu.PrefetchScalarGridSpec(
        num_scalar_prefetch=0,
        grid=grid,
        in_specs=[
            pl.BlockSpec((1, Cin, HW_T), lambda n, h: (n, 0, h)),
            full((Cmid + Cexp, Cin)), full((Cmid + Cexp, 1)), full((Cmid + Cexp, 1)),
            full((Cmid, 3 * Cmid)), full((Cmid, 1)), full((Cmid, 1)),
            full((Cexp, Cmid)), full((Cexp, 1)), full((Cexp, 1)),
        ],
        out_specs=pl.BlockSpec((1, Cexp, HW_T), lambda n, h: (n, 0, h)),
    )

    out = pl.pallas_call(
        functools.partial(_bottleneck_kernel, W=W, Cmid=Cmid),
        out_shape=jax.ShapeDtypeStruct((N, Cexp, H * W), jnp.float32),
        grid_spec=grid_spec,
        compiler_params=pltpu.CompilerParams(
            dimension_semantics=("parallel", "parallel"),
            vmem_limit_bytes=32 * 1024 * 1024),
    )(x_flat, w_stem, s_stem, b_stem, w2f, s2, b2, w3t, s3, b3)

    return out.reshape(N, Cexp, H, W)


# --------------------------- pure-JAX reference ----------------------------- #
def reference_forward(x_nchw, params):
    def bn(x, gamma, beta, mean, var, eps=BN_EPS):
        g = gamma.reshape(1, -1, 1, 1)
        b = beta.reshape(1, -1, 1, 1)
        m = mean.reshape(1, -1, 1, 1)
        v = var.reshape(1, -1, 1, 1)
        return (x - m) / jnp.sqrt(v + eps) * g + b

    conv1x1 = lambda x, w: jnp.einsum('nchw,cd->ndhw', x, w)

    h = jax.nn.relu(bn(conv1x1(x_nchw, params['w1']), *params['bn1']))
    Cmid = params['w2'].shape[2]
    # params['w2'] is (3, Cin, Cout) -> OIHW (Cout, Cin, 1, 3)
    w2_oihw = jnp.transpose(params['w2'], (2, 1, 0)).reshape(Cmid, Cmid, 1, 3)
    h = lax.conv_general_dilated(h, w2_oihw, window_strides=(1, 1),
                                 padding=((0, 0), (1, 1)),
                                 dimension_numbers=('NCHW', 'OIHW', 'NCHW'))
    h = jax.nn.relu(bn(h, *params['bn2']))
    h = bn(conv1x1(h, params['w3']), *params['bn3'])
    sc = bn(conv1x1(x_nchw, params['ws']), *params['bns'])
    return jax.nn.relu(h + sc)


# ------------------------------- params init -------------------------------- #
def init_params(key, in_channels, out_channels):
    Cexp = out_channels * EXPANSION
    ks = jax.random.split(key, 8)

    def bn_params(k, c):
        k1, k2, k3, k4 = jax.random.split(k, 4)
        gamma = jax.random.uniform(k1, (c,), jnp.float32, 0.5, 1.5)
        beta = 0.1 * jax.random.normal(k2, (c,), jnp.float32)
        mean = 0.1 * jax.random.normal(k3, (c,), jnp.float32)
        var = jax.random.uniform(k4, (c,), jnp.float32, 0.5, 1.5)
        return (gamma, beta, mean, var)

    return {
        # 1x1 conv weights stored as (Cin, Cout); (1,3) conv as (kw, Cin, Cout)
        'w1': 0.1 * jax.random.normal(ks[0], (in_channels, out_channels), jnp.float32),
        'bn1': bn_params(ks[1], out_channels),
        'w2': 0.1 * jax.random.normal(ks[2], (3, out_channels, out_channels), jnp.float32),
        'bn2': bn_params(ks[3], out_channels),
        'w3': 0.1 * jax.random.normal(ks[4], (out_channels, Cexp), jnp.float32),
        'bn3': bn_params(ks[5], Cexp),
        'ws': 0.1 * jax.random.normal(ks[6], (in_channels, Cexp), jnp.float32),
        'bns': bn_params(ks[7], Cexp),
    }


# ----------------------------------- main ----------------------------------- #
if __name__ == "__main__":
    key = jax.random.PRNGKey(0)
    k_x, k_p = jax.random.split(key)

    N, Cin, H, W = 2, 16, 16, 16          # PyTorch-style NCHW sizes
    out_channels = 8                       # Cexp = 32

    x_nchw = jax.random.normal(k_x, (N, Cin, H, W), jnp.float32)
    params = init_params(k_p, Cin, out_channels)

    out = jax.block_until_ready(asymmetric_bottleneck(x_nchw, params))
    ref = jax.block_until_ready(reference_forward(x_nchw, params))

    assert out.shape == (N, out_channels * EXPANSION, H, W), out.shape
    assert jnp.allclose(out, ref, atol=1e-4, rtol=1e-4), \
        f"max abs err {jnp.max(jnp.abs(out - ref))}"

    print("KERNEL_OK")
</pallas_src>

<mosaic_0001>
module attributes {stable_mosaic.version = 11 : i64} {
  func.func @_bottleneck_kernel(%arg0: i32, %arg1: i32, %arg2: memref<1x16x128xf32, #tpu.memory_space<vmem>>, %arg3: memref<40x16xf32, #tpu.memory_space<vmem>>, %arg4: memref<40x1xf32, #tpu.memory_space<vmem>>, %arg5: memref<40x1xf32, #tpu.memory_space<vmem>>, %arg6: memref<8x24xf32, #tpu.memory_space<vmem>>, %arg7: memref<8x1xf32, #tpu.memory_space<vmem>>, %arg8: memref<8x1xf32, #tpu.memory_space<vmem>>, %arg9: memref<32x8xf32, #tpu.memory_space<vmem>>, %arg10: memref<32x1xf32, #tpu.memory_space<vmem>>, %arg11: memref<32x1xf32, #tpu.memory_space<vmem>>, %arg12: memref<1x32x128xf32, #tpu.memory_space<vmem>>) attributes {dimension_semantics = [#tpu.dimension_semantics<parallel>, #tpu.dimension_semantics<parallel>], iteration_bounds = array<i64: 2, 2>, scalar_prefetch = 0 : i64, scratch_operands = 0 : i64, tpu.core_type = #tpu.core_type<tc>, window_params = [{transform_indices = @transform_0, window_bounds = array<i64: 1, 16, 128>}, {pipeline_mode = #tpu.pipeline_mode<synchronous>, transform_indices = @transform_1, window_bounds = array<i64: 40, 16>}, {pipeline_mode = #tpu.pipeline_mode<synchronous>, transform_indices = @transform_2, window_bounds = array<i64: 40, 1>}, {pipeline_mode = #tpu.pipeline_mode<synchronous>, transform_indices = @transform_3, window_bounds = array<i64: 40, 1>}, {pipeline_mode = #tpu.pipeline_mode<synchronous>, transform_indices = @transform_4, window_bounds = array<i64: 8, 24>}, {pipeline_mode = #tpu.pipeline_mode<synchronous>, transform_indices = @transform_5, window_bounds = array<i64: 8, 1>}, {pipeline_mode = #tpu.pipeline_mode<synchronous>, transform_indices = @transform_6, window_bounds = array<i64: 8, 1>}, {pipeline_mode = #tpu.pipeline_mode<synchronous>, transform_indices = @transform_7, window_bounds = array<i64: 32, 8>}, {pipeline_mode = #tpu.pipeline_mode<synchronous>, transform_indices = @transform_8, window_bounds = array<i64: 32, 1>}, {pipeline_mode = #tpu.pipeline_mode<synchronous>, transform_indices = @transform_9, window_bounds = array<i64: 32, 1>}, {transform_indices = @transform_10, window_bounds = array<i64: 1, 32, 128>}]} {
    %c0 = arith.constant 0 : index
    %c0_0 = arith.constant 0 : index
    %c0_1 = arith.constant 0 : index
    %0 = vector.load %arg2[%c0, %c0_0, %c0_1] : memref<1x16x128xf32, #tpu.memory_space<vmem>>, vector<1x16x128xf32>
    %1 = vector.shape_cast %0 : vector<1x16x128xf32> to vector<16x128xf32>
    %c0_2 = arith.constant 0 : index
    %c0_3 = arith.constant 0 : index
    %2 = vector.load %arg3[%c0_2, %c0_3] : memref<40x16xf32, #tpu.memory_space<vmem>>, vector<40x16xf32>
    %cst = arith.constant dense<0.000000e+00> : vector<40x128xf32>
    %3 = tpu.matmul %2, %1, %cst {dimension_numbers = #tpu.dot_dimension_numbers<[1], [0], [0], [1], [0, 0, 1, 1], [], []>} : vector<40x16xf32>, vector<16x128xf32>, vector<40x128xf32> -> vector<40x128xf32>
    %c0_4 = arith.constant 0 : index
    %c0_5 = arith.constant 0 : index
    %4 = vector.load %arg4[%c0_4, %c0_5] : memref<40x1xf32, #tpu.memory_space<vmem>>, vector<40x1xf32>
    %5 = vector.broadcast %4 : vector<40x1xf32> to vector<40x128xf32>
    %6 = arith.mulf %3, %5 : vector<40x128xf32>
    %c0_6 = arith.constant 0 : index
    %c0_7 = arith.constant 0 : index
    %7 = vector.load %arg5[%c0_6, %c0_7] : memref<40x1xf32, #tpu.memory_space<vmem>>, vector<40x1xf32>
    %8 = vector.broadcast %7 : vector<40x1xf32> to vector<40x128xf32>
    %9 = arith.addf %6, %8 : vector<40x128xf32>
    %10 = vector.extract_strided_slice %9 {offsets = [0, 0], sizes = [8, 128], strides = [1, 1]} : vector<40x128xf32> to vector<8x128xf32>
    %cst_8 = arith.constant 0.000000e+00 : f32
    %11 = vector.broadcast %cst_8 : f32 to vector<8x128xf32>
    %12 = arith.maximumf %10, %11 : vector<8x128xf32>
    %13 = vector.extract_strided_slice %9 {offsets = [8, 0], sizes = [32, 128], strides = [1, 1]} : vector<40x128xf32> to vector<32x128xf32>
    %14 = tpu.iota {dimensions = array<i32: 1>} : vector<1x128xi32>
    %c16_i32 = arith.constant 16 : i32
    %c0_i32 = arith.constant 0 : i32
    %15 = arith.cmpi eq, %c16_i32, %c0_i32 : i32
    %c1_i32 = arith.constant 1 : i32
    %16 = arith.select %15, %c1_i32, %c16_i32 : i32
    %17 = vector.broadcast %16 : i32 to vector<1x128xi32>
    %18 = arith.remsi %14, %17 : vector<1x128xi32>
    %c0_i32_9 = arith.constant 0 : i32
    %19 = vector.broadcast %c0_i32_9 : i32 to vector<1x128xi32>
    %20 = arith.cmpi ne, %18, %19 : vector<1x128xi32>
    %c0_i32_10 = arith.constant 0 : i32
    %21 = vector.broadcast %c0_i32_10 : i32 to vector<1x128xi32>
    %22 = arith.cmpi slt, %18, %21 : vector<1x128xi32>
    %c0_i32_11 = arith.constant 0 : i32
    %23 = arith.cmpi slt, %16, %c0_i32_11 : i32
    %24 = vector.broadcast %23 : i1 to vector<1x128xi1>
    %25 = vector.broadcast %24 : vector<1x128xi1> to vector<1x128xi1>
    %26 = arith.xori %22, %25 : vector<1x128xi1>
    %27 = arith.andi %26, %20 : vector<1x128xi1>
    %28 = vector.broadcast %16 : i32 to vector<1x128xi32>
    %29 = arith.addi %18, %28 : vector<1x128xi32>
    %30 = arith.select %27, %29, %18 : vector<1x128xi1>, vector<1x128xi32>
    %c1_i32_12 = arith.constant 1 : i32
    %31 = vector.broadcast %c1_i32_12 : i32 to vector<1x128xi32>
    %32 = arith.cmpi sge, %30, %31 : vector<1x128xi32>
    %33 = arith.extui %32 : vector<1x128xi1> to vector<1x128xi32>
    %34 = arith.sitofp %33 : vector<1x128xi32> to vector<1x128xf32>
    %c14_i32 = arith.constant 14 : i32
    %35 = vector.broadcast %c14_i32 : i32 to vector<1x128xi32>
    %36 = arith.cmpi sle, %30, %35 : vector<1x128xi32>
    %37 = arith.extui %36 : vector<1x128xi1> to vector<1x128xi32>
    %38 = arith.sitofp %37 : vector<1x128xi32> to vector<1x128xf32>
    %c1_i32_13 = arith.constant 1 : i32
    %39 = tpu.dynamic_rotate %12 by %c1_i32_13 dim 1 : vector<8x128xf32>, i32 -> vector<8x128xf32>
    %40 = vector.broadcast %34 : vector<1x128xf32> to vector<8x128xf32>
    %41 = arith.mulf %39, %40 : vector<8x128xf32>
    %c127_i32 = arith.constant 127 : i32
    %42 = tpu.dynamic_rotate %12 by %c127_i32 dim 1 : vector<8x128xf32>, i32 -> vector<8x128xf32>
    %43 = vector.broadcast %38 : vector<1x128xf32> to vector<8x128xf32>
    %44 = arith.mulf %42, %43 : vector<8x128xf32>
    %45 = tpu.concatenate %41, %12, %44 in 0 : vector<8x128xf32>, vector<8x128xf32>, vector<8x128xf32> -> vector<24x128xf32>
    %c0_14 = arith.constant 0 : index
    %c0_15 = arith.constant 0 : index
    %46 = vector.load %arg6[%c0_14, %c0_15] : memref<8x24xf32, #tpu.memory_space<vmem>>, vector<8x24xf32>
    %cst_16 = arith.constant dense<0.000000e+00> : vector<8x128xf32>
    %47 = tpu.matmul %46, %45, %cst_16 {dimension_numbers = #tpu.dot_dimension_numbers<[1], [0], [0], [1], [0, 0, 1, 1], [], []>} : vector<8x24xf32>, vector<24x128xf32>, vector<8x128xf32> -> vector<8x128xf32>
    %c0_17 = arith.constant 0 : index
    %c0_18 = arith.constant 0 : index
    %48 = vector.load %arg7[%c0_17, %c0_18] : memref<8x1xf32, #tpu.memory_space<vmem>>, vector<8x1xf32>
    %49 = vector.broadcast %48 : vector<8x1xf32> to vector<8x128xf32>
    %50 = arith.mulf %47, %49 : vector<8x128xf32>
    %c0_19 = arith.constant 0 : index
    %c0_20 = arith.constant 0 : index
    %51 = vector.load %arg8[%c0_19, %c0_20] : memref<8x1xf32, #tpu.memory_space<vmem>>, vector<8x1xf32>
    %52 = vector.broadcast %51 : vector<8x1xf32> to vector<8x128xf32>
    %53 = arith.addf %50, %52 : vector<8x128xf32>
    %cst_21 = arith.constant 0.000000e+00 : f32
    %54 = vector.broadcast %cst_21 : f32 to vector<8x128xf32>
    %55 = arith.maximumf %53, %54 : vector<8x128xf32>
    %c0_22 = arith.constant 0 : index
    %c0_23 = arith.constant 0 : index
    %56 = vector.load %arg9[%c0_22, %c0_23] : memref<32x8xf32, #tpu.memory_space<vmem>>, vector<32x8xf32>
    %cst_24 = arith.constant dense<0.000000e+00> : vector<32x128xf32>
    %57 = tpu.matmul %56, %55, %cst_24 {dimension_numbers = #tpu.dot_dimension_numbers<[1], [0], [0], [1], [0, 0, 1, 1], [], []>} : vector<32x8xf32>, vector<8x128xf32>, vector<32x128xf32> -> vector<32x128xf32>
    %c0_25 = arith.constant 0 : index
    %c0_26 = arith.constant 0 : index
    %58 = vector.load %arg10[%c0_25, %c0_26] : memref<32x1xf32, #tpu.memory_space<vmem>>, vector<32x1xf32>
    %59 = vector.broadcast %58 : vector<32x1xf32> to vector<32x128xf32>
    %60 = arith.mulf %57, %59 : vector<32x128xf32>
    %c0_27 = arith.constant 0 : index
    %c0_28 = arith.constant 0 : index
    %61 = vector.load %arg11[%c0_27, %c0_28] : memref<32x1xf32, #tpu.memory_space<vmem>>, vector<32x1xf32>
    %62 = vector.broadcast %61 : vector<32x1xf32> to vector<32x128xf32>
    %63 = arith.addf %60, %62 : vector<32x128xf32>
    %64 = arith.addf %63, %13 : vector<32x128xf32>
    %cst_29 = arith.constant 0.000000e+00 : f32
    %65 = vector.broadcast %cst_29 : f32 to vector<32x128xf32>
    %66 = arith.maximumf %64, %65 : vector<32x128xf32>
    %c0_30 = arith.constant 0 : index
    %c0_31 = arith.constant 0 : index
    %c0_32 = arith.constant 0 : index
    %67 = vector.load %arg12[%c0_30, %c0_31, %c0_32] : memref<1x32x128xf32, #tpu.memory_space<vmem>>, vector<1x32x128xf32>
    %68 = vector.shape_cast %67 : vector<1x32x128xf32> to vector<32x128xf32>
    %69 = vector.shape_cast %66 : vector<32x128xf32> to vector<1x32x128xf32>
    tpu.vector_store %arg12[%c0_30, %c0_31, %c0_32], %69 {strides = array<i32>} : memref<1x32x128xf32, #tpu.memory_space<vmem>>, vector<1x32x128xf32>,
    return
  }
  func.func @transform_0(%arg0: i32, %arg1: i32) -> (i32, i32, i32) {
    %c0_i32 = arith.constant 0 : i32
    %c0_i32_0 = arith.constant 0 : i32
    return %arg0, %c0_i32, %arg1 : i32, i32, i32
  }
  func.func @transform_1(%arg0: i32, %arg1: i32) -> (i32, i32) {
    %c0_i32 = arith.constant 0 : i32
    %c0_i32_0 = arith.constant 0 : i32
    %c0_i32_1 = arith.constant 0 : i32
    return %c0_i32, %c0_i32_0 : i32, i32
  }
  func.func @transform_2(%arg0: i32, %arg1: i32) -> (i32, i32) {
    %c0_i32 = arith.constant 0 : i32
    %c0_i32_0 = arith.constant 0 : i32
    %c0_i32_1 = arith.constant 0 : i32
    return %c0_i32, %c0_i32_0 : i32, i32
  }
  func.func @transform_3(%arg0: i32, %arg1: i32) -> (i32, i32) {
    %c0_i32 = arith.constant 0 : i32
    %c0_i32_0 = arith.constant 0 : i32
    %c0_i32_1 = arith.constant 0 : i32
    return %c0_i32, %c0_i32_0 : i32, i32
  }
  func.func @transform_4(%arg0: i32, %arg1: i32) -> (i32, i32) {
    %c0_i32 = arith.constant 0 : i32
    %c0_i32_0 = arith.constant 0 : i32
    %c0_i32_1 = arith.constant 0 : i32
    return %c0_i32, %c0_i32_0 : i32, i32
  }
  func.func @transform_5(%arg0: i32, %arg1: i32) -> (i32, i32) {
    %c0_i32 = arith.constant 0 : i32
    %c0_i32_0 = arith.constant 0 : i32
    %c0_i32_1 = arith.constant 0 : i32
    return %c0_i32, %c0_i32_0 : i32, i32
  }
  func.func @transform_6(%arg0: i32, %arg1: i32) -> (i32, i32) {
    %c0_i32 = arith.constant 0 : i32
    %c0_i32_0 = arith.constant 0 : i32
    %c0_i32_1 = arith.constant 0 : i32
    return %c0_i32, %c0_i32_0 : i32, i32
  }
  func.func @transform_7(%arg0: i32, %arg1: i32) -> (i32, i32) {
    %c0_i32 = arith.constant 0 : i32
    %c0_i32_0 = arith.constant 0 : i32
    %c0_i32_1 = arith.constant 0 : i32
    return %c0_i32, %c0_i32_0 : i32, i32
  }
  func.func @transform_8(%arg0: i32, %arg1: i32) -> (i32, i32) {
    %c0_i32 = arith.constant 0 : i32
    %c0_i32_0 = arith.constant 0 : i32
    %c0_i32_1 = arith.constant 0 : i32
    return %c0_i32, %c0_i32_0 : i32, i32
  }
  func.func @transform_9(%arg0: i32, %arg1: i32) -> (i32, i32) {
    %c0_i32 = arith.constant 0 : i32
    %c0_i32_0 = arith.constant 0 : i32
    %c0_i32_1 = arith.constant 0 : i32
    return %c0_i32, %c0_i32_0 : i32, i32
  }
  func.func @transform_10(%arg0: i32, %arg1: i32) -> (i32, i32, i32) {
    %c0_i32 = arith.constant 0 : i32
    %c0_i32_0 = arith.constant 0 : i32
    return %arg0, %c0_i32, %arg1 : i32, i32, i32
  }
}

</mosaic_0001>

<bundles_post_ra>
// kernel: asymmetric_bottleneck.1
= control target key start
LH: loop header
LB: loop body
LE: loop exit
PB: predicated region body
PF: predicated region fallthrough
CT: control target
= control target key end

     0   :  { %s1496_s0 = inlined_call_operand.vmem [shape: f32[2,16,256], index: 0, kind: input, shape index: {}]   ;;  %s1497_s1 = inlined_call_operand.vmem [shape: f32[40,16], index: 1, kind: input, shape index: {}]   ;;  %s1498_s2 = inlined_call_operand.vmem [shape: f32[40,1], index: 2, kind: input, shape index: {}]   ;;  %s1499_s3 = inlined_call_operand.vmem [shape: f32[40,1], index: 3, kind: input, shape index: {}]   ;;  %s1500_s4 = inlined_call_operand.vmem [shape: f32[8,24], index: 4, kind: input, shape index: {}]   ;;  %s1501_s5 = inlined_call_operand.vmem [shape: f32[8,1], index: 5, kind: input, shape index: {}]   ;;  %s1502_s6 = inlined_call_operand.vmem [shape: f32[8,1], index: 6, kind: input, shape index: {}]   ;;  %s1503_s7 = inlined_call_operand.vmem [shape: f32[32,8], index: 7, kind: input, shape index: {}]   ;;  %s1504_s8 = inlined_call_operand.vmem [shape: f32[32,1], index: 8, kind: input, shape index: {}]   ;;  %s1505_s9 = inlined_call_operand.vmem [shape: f32[32,1], index: 9, kind: input, shape index: {}]   ;;  %s1506_s10 = inlined_call_operand.vmem [shape: f32[2,32,256], index: 10, kind: output, shape index: {}]  }
   0x1   :  { %1508 = sst [smem:[#allocation5_spill]] %s1506_s10 }
   0x2   :  { %s1273_s13 = smov 0   ;;  %s1275_s14 = smov 0  }
   0x3   :  { %s1277_s15 = smov 0   ;;  %s1279_s16 = smov 0  }
   0x4   :  { %s1281_s17 = smov 0   ;;  %s1283_s18 = smov 0  }
   0x5   :  { %s1285_s19 = smov 0  }
   0x6 LB: > { %s29_s20 = sadd.s32 1, %s1202_s17  ;;  %s32_s21 = sadd.s32 1, %s1206_s18  ;;  %s1210_s19 = sphi %s1285_s19, %s20_s19   ;;  %s1206_s18 = sphi %s1283_s18, %s1518_s18   ;;  %s1202_s17 = sphi %s1281_s17, %s1517_s17   ;;  %s1198_s16 = sphi %s1279_s16, %s1516_s16   ;;  %s1194_s15 = sphi %s1277_s15, %s1515_s15   ;;  %s1190_s14 = sphi %s1275_s14, %s1514_s14   ;;  %s1186_s13 = sphi %s1273_s13, %s1513_s13  }
   0x7   : > { %p30_p0 = scmp.ge.s32.totalorder %s29_s20, 2  ;;  %s1007_s22 = sadd.s32 4294967295, %s1210_s19  }
   0x8   : > { %p48_p1 = scmp.ne.s32.totalorder %s1190_s14, %s1186_s13  ;;  %p49_p2 = scmp.eq.s32.totalorder %s1210_s19, 0 }
   0x9   : > { %s1520_s20 = smov (%p30_p0, %s29_s20), 0  ;;  %s1522_s21 = smov (!%p30_p0, %s32_s21), %s1206_s18 }
   0xa   : > { %1509 = sst [smem:[#allocation4_spill]] %s1520_s20  ;;  %p34_p3 = scmp.ge.s32.totalorder %s1522_s21, 2 }
   0xb   : > { %p269_p4 = scmp.eq.s32.totalorder %s1007_s22, 3  ;;  %s37_s23 = ssub.s32 %s1202_s17, %s1520_s20 }
   0xc   : > { %p50_p5 = por %p49_p2, %p48_p1  ;;  %s1524_s21 = smov (%p34_p3, %s1522_s21), 0 }
   0xd   : > { %p1321_p6 = por %p269_p4, %p48_p1  ;;  %s36_s25 = ssub.s32 %s1206_s18, %s1524_s21 }
   0xe   : > { %s38_s26 = sor.u32 %s37_s23, %s36_s25  ;;  %s41_s27 = sadd.s32 1, %s1190_s14 }
   0xf   : > { %p39_p7 = scmp.eq.s32.totalorder %s38_s26, 0  ;;  %p1010_p8 = scmp.ge.s32.totalorder %s1210_s19, 4 }
  0x11   : > { %s1329_s28 = scalar_select %p39_p7, %s1190_s14, %s41_s27  }
  0x12   : > { %318 = sbr.rel (%p1010_p8) target bundleno = 32 (0x20), region = 52 }
  0x19   : > { %321 = sbr.rel (!%p50_p5) target bundleno = 32 (0x20), region = 56  ;;  %s323_s29 = sand.u32 (%p50_p5), 1, %s1190_s14  }
  0x1a   : > { %s1012_s30 = sshll.u32 (%p50_p5), %s1206_s18, 2  ;;  %s1011_s11 = sshll.u32 (%p50_p5), %s323_s29, 4 }
  0x1b   : > { %s327_s12 = sadd.s32 (%p50_p5), %s1202_s17, %s1012_s30  ;;  %s325_s25 = scalar_lea.vmem (%p50_p5), [#allocation2], %s1011_s11 }
  0x1c   : > { %s1013_s22 = sshll.u32 (%p50_p5), %s327_s12, 3 }
  0x1d   : > { %s329_s23 = scalar_lea.vmem (%p50_p5), %s1496_s0, %s1013_s22 }
  0x1e   : > { %v359_v0 = vld [vmem:[%s329_s23] sm:$0xff] (%p50_p5)  ;;  %v361_v1 = vld [vmem:[%s329_s23 + $0x10] sm:$0xff] (%p50_p5) }
  0x1f   : > { %360 = vst [vmem:[%s325_s25] sm:$0xff] (%p50_p5), %v359_v0  ;;  %362 = vst [vmem:[%s325_s25 + $0x8] sm:$0xff] (%p50_p5), %v361_v1 }
  0x20 PF: > { %p1014_p9 = scmp.ge.s32.totalorder %s1210_s19, 1  ;;  %p367_p10 = scmp.lt.s32.totalorder %s1210_s19, 5 }
  0x22   : > { %p368_p11 = pnand %p1014_p9, %p367_p10 }
  0x23   : > { %s374_s26 = sand.u32 (!%p368_p11), 1, %s1186_s13   ;;  %v1212_v2 = vmov (!%p368_p11), 0.0|0.0   ;;  %vm1213_vm0 = vmmov (!%p368_p11), 0   ;;  %v1214_v3 = vmov (!%p368_p11), 0.0   ;;  %v1215_v4 = vmov (!%p368_p11), 0   ;;  %v523_v5 = vld [vmem:[%s1498_s2] sm:$0xff] (!%p368_p11) }
  0x24   : > { %371 = sbr.rel (%p368_p11) target bundleno = 840 (0x348), region = 94  ;;  %1086 = vmatprep.subr.bf16.mxu0 (!%p368_p11), %v1212_v2  ;;  %s1015_s10 = sshll.u32 (!%p368_p11), %s374_s26, 4  ;;  %1054 = vmatprep.mubr.msk.f32.mxu0 (!%p368_p11), %vm1213_vm0, %v1214_v3  ;;  %v558_v9 = vld [vmem:[%s1499_s3] sm:$0xff] (!%p368_p11)  ;;  %vm417_vm1 = vcmask (!%p368_p11), 130048   ;;  %v413_v12 = vld [vmem:[%s1497_s1 + $0x8] sm:$0xff] (!%p368_p11)  ;;  %v414_v14 = vld [vmem:[%s1497_s1 + $0x10] sm:$0xff] (!%p368_p11)  ;;  %v594_v46 = vlaneseq (!%p368_p11) }
  0x25   : > { %1154 = vset.pattern.permute.xlu0 (!%p368_p11), %v1215_v4  ;;  %1089 = vmatprep.subr.bf16.mxu1 (!%p368_p11), %v1212_v2  ;;  %s376_s29 = scalar_lea.vmem (!%p368_p11), [#allocation2], %s1015_s10  ;;  %v412_v10 = vld [vmem:[%s1497_s1] sm:$0xff] (!%p368_p11)  ;;  %v524_v13 = vld [vmem:[%s1498_s2 + $0x8] sm:$0xff] (!%p368_p11)  ;;  %v526_v15 = vld [vmem:[%s1498_s2 + $0x18] sm:$0xff] (!%p368_p11)  ;;  %s1216_s30 = smov (!%p368_p11), 1   ;;  %vm621_vm4 = vcmask (!%p368_p11), 195584  }
  0x26   : > { %v410_v6 = vld [vmem:[%s376_s29] sm:$0xff] (!%p368_p11)  ;;  %v411_v7 = vld [vmem:[%s376_s29 + $0x8] sm:$0xff] (!%p368_p11)  ;;  %530 = vperm.xlu0 (!%p368_p11), %1154, %v523_v5   ;;  %1075 = vmatprep.mubr.msk.f32.mxu1 (!%p368_p11), %vm1213_vm0, %v1214_v3  ;;  %s1217_s11 = smov (!%p368_p11), 127   ;;  %v595_v47 = vand.u32 (!%p368_p11), 127, %v594_v46  ;;  %vm714_vm5 = vcmask (!%p368_p11), 64512  }
  0x27   : > { %v1087_v8 = vpack.c.bf16 (!%p368_p11), %v411_v7, %v410_v6  ;;  %1155 = vset.pattern.permute.xlu1 (!%p368_p11), %v1215_v4  ;;  %v695_v11 = vld [vmem:[%s1501_s5] sm:$0xff] (!%p368_p11)  ;;  %v415_v16 = vld [vmem:[%s1497_s1 + $0x18] sm:$0xff] (!%p368_p11)  ;;  %v814_v18 = vld [vmem:[%s1504_s8 + $0x10] sm:$0xff] (!%p368_p11) }
  0x28   : > { %v812_v17 = vld [vmem:[%s1504_s8] sm:$0xff] (!%p368_p11)  ;;  %v559_v19 = vld [vmem:[%s1499_s3 + $0x8] sm:$0xff] (!%p368_p11)  ;;  %v561_v20 = vld [vmem:[%s1499_s3 + $0x18] sm:$0xff] (!%p368_p11)  ;;  %v600_v48 = vand.u32 (!%p368_p11), 15, %v595_v47 }
  0x29   : > { %1088 = vmatpush3.bf16.msra.mxu0 (!%p368_p11), %v1087_v8  ;;  %v840_v21 = vld [vmem:[%s1505_s9] sm:$0xff] (!%p368_p11)  ;;  %v842_v22 = vld [vmem:[%s1505_s9 + $0x10] sm:$0xff] (!%p368_p11)  ;;  %v813_v40 = vld [vmem:[%s1504_s8 + $0x8] sm:$0xff] (!%p368_p11) }
  0x2a   : > { %565 = vperm.xlu0 (!%p368_p11), %1154, %v558_v9   ;;  %v416_v28 = vld [vmem:[%s1497_s1 + $0x20] sm:$0xff] (!%p368_p11)  ;;  %v525_v38 = vld [vmem:[%s1498_s2 + $0x10] sm:$0xff] (!%p368_p11)  ;;  %v815_v41 = vld [vmem:[%s1504_s8 + $0x18] sm:$0xff] (!%p368_p11)  ;;  %vm608_vm2 = vcmp.ge.s32.totalorder (!%p368_p11), %v600_v48, 1  ;;  %vm611_vm3 = vcmp.le.s32.totalorder (!%p368_p11), %v600_v48, 14 }
  0x2b   : > { %v702_v36 = vld [vmem:[%s1502_s6] sm:$0xff]  ;;  %v560_v42 = vld [vmem:[%s1499_s3 + $0x10] sm:$0xff]  ;;  %v841_v44 = vld [vmem:[%s1505_s9 + $0x8] sm:$0xff]  ;;  %v1022_v49 = vsel %vm608_vm2, 1.0, %v1214_v3  ;;  %v1023_v53 = vsel %vm611_vm3, 1.0, %v1214_v3  ;;  %s1511_s25 = sld [smem:[#allocation5_spill]] (%p1321_p6) }
  0x2c   : > { %1055 = vmatmul.mubr.msk.f32.vlgmr.msra.gmra.mrb[0].mxu0 %vm417_vm1, %v412_v10  ;;  %v527_v39 = vld [vmem:[%s1498_s2 + $0x20] sm:$0xff]  ;;  %v843_v45 = vld [vmem:[%s1505_s9 + $0x18] sm:$0xff]  ;;  %v712_v4 = vld [vmem:[%s1503_s7 + $0x10] sm:$0xff] }
  0x2d   : > { %1057 = vmatprep.mubr.msk.f32.mxu0 %vm1213_vm0, %v1214_v3  ;;  %v562_v43 = vld [vmem:[%s1499_s3 + $0x20] sm:$0xff]  ;;  %v713_v5 = vld [vmem:[%s1503_s7 + $0x18] sm:$0xff] }
  0x2e   : > { %698 = vperm.xlu0 %1154, %v695_v11   ;;  %v620_v56 = vld [vmem:[%s1500_s4] sm:$0xff] }
  0x2f   : > { %v710_v59 = vld [vmem:[%s1503_s7] sm:$0xff] }
  0x30   : > { %1058 = vmatmul.mubr.msk.f32.gmra.mrb[2].mxu0 %vm417_vm1, %v413_v12 }
  0x31   : > { %1060 = vmatprep.mubr.msk.f32.mxu0 %vm1213_vm0, %v1214_v3 }
  0x32   : > { %535 = vperm.xlu0 %1154, %v524_v13  }
  0x34   : > { %1061 = vmatmul.mubr.msk.f32.gmra.mrb[4].mxu0 %vm417_vm1, %v414_v14 }
  0x35   : > { %1063 = vmatprep.mubr.msk.f32.mxu0 %vm1213_vm0, %v1214_v3 }
  0x36   : > { %545 = vperm.xlu0 %1154, %v526_v15  }
  0x38   : > { %1064 = vmatmul.mubr.msk.f32.gmra.mrb[6].mxu0 %vm417_vm1, %v415_v16 }
  0x39   : > { %1066 = vmatprep.mubr.msk.f32.mxu0 %vm1213_vm0, %v1214_v3 }
  0x3a   : > { %818 = vperm.xlu0 %1154, %v812_v17  }
  0x3c   : > { %1067 = vmatmul.mubr.msk.f32.gmra.mrb[8].mxu0 %vm417_vm1, %v416_v28 }
  0x3e   : > { %828 = vperm.xlu0 %1154, %v814_v18  }
  0x42   : > { %570 = vperm.xlu0 %1154, %v559_v19  }
  0x46   : > { %580 = vperm.xlu0 %1154, %v561_v20  }
  0x4a   : > { %846 = vperm.xlu0 %1154, %v840_v21  }
  0x4e   : > { %856 = vperm.xlu0 %1154, %v842_v22  }
  0xa5   : > { %v531_v23 = vpop.permute.xlu0 %530 }
  0xa9   : > { %v566_v27 = vpop.permute.xlu0 %565 }
  0xad   : > { %v699_v60 = vpop.permute.xlu0 %698 }
  0xb1   : > { %v536_v7 = vpop.permute.xlu0 %535 }
  0xb5   : > { %v546_v9 = vpop.permute.xlu0 %545 }
  0xb9   : > { %v819_v11 = vpop.permute.xlu0 %818 }
  0xbd   : > { %v829_v13 = vpop.permute.xlu0 %828 }
  0xc1   : > { %v571_v15 = vpop.permute.xlu0 %570 }
  0xc5   : > { %v581_v17 = vpop.permute.xlu0 %580 }
  0xc9   : > { %v847_v22 = vpop.permute.xlu0 %846 }
  0xff   : > { %v499_v24 = vpop.f32.mrb[0].mxu0 }
 0x100   : > { %v553_v25 = vmul.f32 %v531_v23, %v499_v24  ;;  %v1056_v26 = vpop.f32.mrb[1].mxu0 }
 0x102   : > { %v588_v29 = vadd.f32 %v566_v27, %v553_v25 }
 0x103   : > { %v1408_v30 = vpop.f32.mrb[2].mxu0 }
 0x104   : > { %v593_v31 = vmax.f32 %v588_v29, 0.0  ;;  %v1059_v32 = vpop.f32.mrb[3].mxu0  ;;  %v554_v19 = vmul.f32 %v536_v7, %v1408_v30 }
 0x106   : > { %614 = vrot.lane.b32.xlu1 %v593_v31, %s1216_s30  ;;  %s1016_s30 = sshll.u32 %s374_s26, 5  ;;  %v589_v29 = vadd.f32 %v571_v15, %v554_v19  ;;  %s1030_s26 = sshll.u32 (%p1321_p6), %s1198_s16, 3 }
 0x107   : > { %v1410_v33 = vpop.f32.mrb[4].mxu0  ;;  %s409_s13 = scalar_lea.vmem [#allocation3], %s1016_s30 }
 0x108   : > { %v1062_v34 = vpop.f32.mrb[5].mxu0 }
 0x10a   : > { %617 = vrot.lane.b32.xlu1 %v593_v31, %s1217_s11  ;;  %s888_s11 = sadd.s32 (%p1321_p6), %s1194_s15, %s1030_s26 }
 0x10b   : > { %v1412_v35 = vpop.f32.mrb[6].mxu0  ;;  %s1031_s12 = sshll.u32 (%p1321_p6), %s888_s11, 3 }
 0x10c   : > { %v1065_v37 = vpop.f32.mrb[7].mxu0  ;;  %s890_s10 = scalar_lea.vmem (%p1321_p6), %s1511_s25, %s1031_s12 }
 0x10e   : > { %705 = vperm.xlu1 %1155, %v702_v36  }
 0x10f   : > { %v519_v57 = vpop.f32.mrb[8].mxu0 }
 0x110   : > { %v1068_v58 = vpop.f32.mrb[9].mxu0 }
 0x112   : > { %540 = vperm.xlu1 %1155, %v525_v38  }
 0x116   : > { %550 = vperm.xlu1 %1155, %v527_v39  }
 0x11a   : > { %823 = vperm.xlu1 %1155, %v813_v40   ;;  %v857_v40 = vpop.permute.xlu0 %856 }
 0x11e   : > { %833 = vperm.xlu1 %1155, %v815_v41  }
 0x122   : > { %575 = vperm.xlu1 %1155, %v560_v42  }
 0x126   : > { %585 = vperm.xlu1 %1155, %v562_v43  }
 0x12a   : > { %851 = vperm.xlu1 %1155, %v841_v44  }
 0x12e   : > { %861 = vperm.xlu1 %1155, %v843_v45  }
 0x178   : > { %v615_v50 = vpop.permute.xlu1 %614 }
 0x179   : > { %v616_v51 = vmul.f32 %v1022_v49, %v615_v50 }
 0x17b   : > { %v1090_v52 = vpack.c.bf16 %v593_v31, %v616_v51  ;;  %v556_v31 = vmul.f32 %v546_v9, %v1412_v35 }
 0x17c   : > { %v618_v54 = vpop.permute.xlu1 %617 }
 0x17d   : > { %1091 = vmatpush3.bf16.msra.mxu1 %v1090_v52  ;;  %v619_v55 = vmul.f32 %v1023_v53, %v618_v54  ;;  %v591_v44 = vadd.f32 %v581_v17, %v556_v31 }
 0x17e   : > { %1073 = vmatprep.subr.mxu1 %v1214_v3  ;;  %v711_v3 = vld [vmem:[%s1503_s7 + $0x8] sm:$0xff] }
 0x181   : > { %1074 = vmatpush3.msra.mxu1 %v619_v55 }
 0x182   : > { %1076 = vmatmul.mubr.msk.f32.vlgmr.msra.gmra.mrb[0].mxu1 %vm621_vm4, %v620_v56 }
 0x183   : > { %1080 = vmatprep.mubr.msk.f32.mxu1 %vm714_vm5, %v710_v59 }
 0x18d   : > { %v706_v0 = vpop.permute.xlu1 %705 }
 0x191   : > { %v541_v6 = vpop.permute.xlu1 %540 }
 0x192   : > { %v555_v18 = vmul.f32 %v541_v6, %v1410_v33 }
 0x195   : > { %v551_v8 = vpop.permute.xlu1 %550 }
 0x196   : > { %v557_v27 = vmul.f32 %v551_v8, %v519_v57 }
 0x199   : > { %v824_v10 = vpop.permute.xlu1 %823 }
 0x19d   : > { %v834_v12 = vpop.permute.xlu1 %833 }
 0x1a1   : > { %v576_v14 = vpop.permute.xlu1 %575 }
 0x1a2   : > { %v590_v26 = vadd.f32 %v576_v14, %v555_v18 }
 0x1a5   : > { %v586_v16 = vpop.permute.xlu1 %585 }
 0x1a6   : > { %v592_v41 = vadd.f32 %v586_v16, %v557_v27 }
 0x1a9   : > { %v852_v20 = vpop.permute.xlu1 %851 }
 0x1ad   : > { %v862_v30 = vpop.permute.xlu1 %861 }
 0x255   : > { %v691_v61 = vpop.f32.mrb[0].mxu1 }
 0x256   : > { %v701_v62 = vmul.f32 %v699_v60, %v691_v61  ;;  %v1077_v63 = vpop.f32.mrb[1].mxu1 }
 0x258   : > { %v708_v1 = vadd.f32 %v706_v0, %v701_v62 }
 0x25a   : > { %v709_v2 = vmax.f32 %v708_v1, 0.0 }
 0x25c   : > { %1078 = vmatprep.subr.mxu1 %v709_v2 }
 0x25d   : > { %1079 = vmatpush3.msra.mxu1 %v709_v2 }
 0x25e   : > { %1081 = vmatmul.mubr.msk.f32.vlgmr.msra.gmra.mrb[2].mxu1 %vm714_vm5, %v711_v3 }
 0x25f   : > { %1083 = vmatprep.mubr.msk.f32.mxu1 %vm714_vm5, %v712_v4 }
 0x262   : > { %1084 = vmatmul.mubr.msk.f32.gmra.mrb[4].mxu1 %vm714_vm5, %v713_v5 }
 0x331   : > { %v1082_v21 = vpop.f32.mrb[2].mxu1 }
 0x332   : > { %v837_v23 = vmul.f32 %v1082_v21, %v824_v10  ;;  %v793_v24 = vpop.f32.mrb[3].mxu1 }
 0x333   : > { %v836_v25 = vmul.f32 %v819_v11, %v793_v24 }
 0x334   : > { %v865_v28 = vadd.f32 %v852_v20, %v837_v23 }
 0x335   : > { %v864_v32 = vadd.f32 %v847_v22, %v836_v25  ;;  %v1085_v34 = vpop.f32.mrb[4].mxu1 }
 0x336   : > { %v869_v36 = vadd.f32 %v865_v28, %v590_v26  ;;  %v839_v33 = vmul.f32 %v1085_v34, %v834_v12  ;;  %v803_v37 = vpop.f32.mrb[5].mxu1 }
 0x337   : > { %v868_v38 = vadd.f32 %v864_v32, %v589_v29  ;;  %v838_v39 = vmul.f32 %v829_v13, %v803_v37 }
 0x338   : > { %v873_v42 = vmax.f32 %v869_v36, 0.0  ;;  %v867_v43 = vadd.f32 %v862_v30, %v839_v33 }
 0x339   : > { %v872_v45 = vmax.f32 %v868_v38, 0.0  ;;  %v866_v46 = vadd.f32 %v857_v40, %v838_v39  ;;  %886 = sbr.rel (!%p1321_p6) target bundleno = 840 (0x348), region = 102 }
 0x33a   : > { %877 = vst [vmem:[%s409_s13 + $0x8] sm:$0xff] %v873_v42  ;;  %v871_v47 = vadd.f32 %v867_v43, %v592_v41 }
 0x33b   : > { %876 = vst [vmem:[%s409_s13] sm:$0xff] %v872_v45  ;;  %v870_v35 = vadd.f32 %v866_v46, %v591_v44 }
 0x33c   : > { %v875_v48 = vmax.f32 %v871_v47, 0.0 }
 0x33d   : > { %v874_v49 = vmax.f32 %v870_v35, 0.0 }
 0x33e   : > { %879 = vst [vmem:[%s409_s13 + $0x18] sm:$0xff] %v875_v48 }
 0x33f   : > { %878 = vst [vmem:[%s409_s13 + $0x10] sm:$0xff] %v874_v49 }
 0x341   : > { %v926_v51 = vld [vmem:[%s409_s13 + $0x8] sm:$0xff] }
 0x342   : > { %v924_v50 = vld [vmem:[%s409_s13] sm:$0xff]  ;;  %927 = vst [vmem:[%s890_s10 + $0x10] sm:$0xff] %v926_v51 }
 0x343   : > { %925 = vst [vmem:[%s890_s10] sm:$0xff] %v924_v50 }
 0x345   : > { %v930_v53 = vld [vmem:[%s409_s13 + $0x18] sm:$0xff] }
 0x346   : > { %v928_v52 = vld [vmem:[%s409_s13 + $0x10] sm:$0xff]  ;;  %931 = vst [vmem:[%s890_s10 + $0x30] sm:$0xff] %v930_v53 }
 0x347   : > { %929 = vst [vmem:[%s890_s10 + $0x20] sm:$0xff] %v928_v52 }
 0x348 PF: > { %s20_s19 = sadd.s32 1, %s1210_s19   ;;  %s1512_s24 = sld [smem:[#allocation4_spill]] }
 0x349   : > { %p17_p12 = scmp.ge.s32.totalorder %s20_s19, 6   ;;  %s1513_s13 = smov %s1190_s14 }
 0x34a   : > { %s1514_s14 = smov %s1329_s28  ;;  %s1515_s15 = smov %s1202_s17 }
 0x34b   : > { %s1516_s16 = smov %s1206_s18  ;;  %s1518_s18 = smov %s1524_s21 }
 0x34c   :  { %19 = sbr.rel (!%p17_p12) target bundleno = 6 (0x6), region = 171 }
 0x34e   : > { %s1517_s17 = smov %s1512_s24 }

</bundles_post_ra>
